<compile_context>
chip_gen: v7x
topology: tpu7x:2x2x1
jax: 0.10.0
libtpu: 0.0.40
codegen_flags: <defaults>
</compile_context>

<pallas_src>
import functools

import jax
import jax.numpy as jnp
from jax.experimental import pallas as pl
from jax.experimental.pallas import tpu as pltpu

IN_FEATURES = 2
HIDDEN = 4
LANES = 128


def _gate_kernel(x_ref, w1_ref, b1_ref, w2_ref, b2_ref, o_ref):
    # x_ref : (2, S_tile, 128) VMEM     w1_ref: (2, 4) SMEM   b1_ref: (4,) SMEM
    # o_ref : (E, S_tile, 128) VMEM     w2_ref: (4, E) SMEM   b2_ref: (E,) SMEM
    num_experts = o_ref.shape[0]

    # Fully dense (S_tile, 128) slabs: all 8 sublanes + 128 lanes used.
    x0 = x_ref[0].astype(jnp.float32)
    x1 = x_ref[1].astype(jnp.float32)

    # Linear(2, 4) + ReLU, unrolled scalar*vector FMAs (weights from SMEM).
    h = []
    for j in range(HIDDEN):
        hj = x0 * w1_ref[0, j] + x1 * w1_ref[1, j] + b1_ref[j]
        h.append(jnp.maximum(hj, 0.0))

    # Linear(4, E), unrolled (K=4 contraction stays on the VPU; MXU idle).
    # TODO(synk): for num_experts >~ 32, switch to a [B_tile,4]x[4,E] MXU dot
    # with an XLU row-softmax instead of fully unrolling the expert axis.
    logits = []
    for e in range(num_experts):
        acc = h[0] * w2_ref[0, e]
        for j in range(1, HIDDEN):
            acc = acc + h[j] * w2_ref[j, e]
        logits.append(acc + b2_ref[e])

    # Numerically-stable softmax over experts (per-lane, VPU only).
    m = logits[0]
    for e in range(1, num_experts):
        m = jnp.maximum(m, logits[e])
    exps = [jnp.exp(lg - m) for lg in logits]
    denom = exps[0]
    for e in range(1, num_experts):
        denom = denom + exps[e]
    # Exact reciprocal: rows sum to 1 to f32 precision (approx vrcp did not).
    inv = pl.reciprocal(denom)

    for e in range(num_experts):
        o_ref[e] = (exps[e] * inv).astype(o_ref.dtype)  # dense (S_tile,128) store


def _default_block_s(num_groups, num_experts, *,
                     vmem_budget_bytes=8 << 20, min_grid_steps=4):
    """Pick the S_tile (number of (8,128)-sublane groups... actually 128-wide
    batch rows) per grid step.

    Per row of 128 batch columns (f32, 512 bytes each):
      * I/O tiles, double-buffered:            2 * (2 + E) rows
      * live full-width intermediates
        (x0, x1, h[4], logits[E], exps[E], m, denom):  ~ 8 + 2E rows
    Budget is conservative so it fits v5e's 16 MiB scoped-VMEM default and
    v7x's 64 MiB physical / 32 MiB default without setting vmem_limit_bytes.
    """
    per_row = (2 * (IN_FEATURES + num_experts) + (8 + 2 * num_experts)) * LANES * 4
    cap = max(8, (vmem_budget_bytes // per_row) // 8 * 8)
    # Keep >= min_grid_steps grid steps when there is enough work, so the DMA
    # pipeline overlaps and (on v7x) both TensorCores get tiles.
    ceil_steps = (num_groups + min_grid_steps - 1) // min_grid_steps
    target = max(8, ((ceil_steps + 7) // 8) * 8)
    bs = min(cap, target)
    if bs >= num_groups:
        return num_groups  # single full-extent tile (satisfies the (8,128) rule)
    return bs              # multiple of 8


def _gate_pallas(x3, w1, b1, w2, b2, *, block_s):
    """x3: [2, S, 128] -> [E, S, 128]; batch element b = 128*s + lane."""
    f, s, lanes = x3.shape
    num_experts = w2.shape[1]
    smem = pl.BlockSpec(memory_space=pltpu.MemorySpace.SMEM)
    return pl.pallas_call(
        _gate_kernel,
        out_shape=jax.ShapeDtypeStruct((num_experts, s, lanes), jnp.float32),
        grid_spec=pltpu.PrefetchScalarGridSpec(
            num_scalar_prefetch=0,
            grid=(pl.cdiv(s, block_s),),
            in_specs=[
                pl.BlockSpec((f, block_s, lanes), lambda i: (0, i, 0)),
                smem,  # w1 scalars
                smem,  # b1 scalars
                smem,  # w2 scalars
                smem,  # b2 scalars
            ],
            out_specs=pl.BlockSpec((num_experts, block_s, lanes),
                                   lambda i: (0, i, 0)),
        ),
        compiler_params=pltpu.CompilerParams(
            # Batch axis is embarrassingly parallel -> megacore sharding on v7x.
            dimension_semantics=("parallel",),
        ),
    )(x3, w1, b1, w2, b2)


@functools.partial(jax.jit, static_argnames=("block_s",))
def gate_layers_shallow_forward_dense(x3, w1, b1, w2, b2, *, block_s=None):
    """Transpose-free path for layout-aware callers: [2,S,128] -> [E,S,128]."""
    num_experts = w2.shape[1]
    if block_s is None:
        block_s = _default_block_s(x3.shape[1], num_experts)
    return _gate_pallas(x3, w1, b1, w2, b2, block_s=block_s)


@functools.partial(jax.jit, static_argnames=("block_s",))
def gate_layers_shallow_forward(x, w1, b1, w2, b2, *, block_s=None):
    """PyTorch semantics: x [B, 2] -> softmax gate probs [B, E] (float32)."""
    batch, feats = x.shape
    assert feats == IN_FEATURES
    num_experts = w2.shape[1]

    b_pad = ((batch + LANES - 1) // LANES) * LANES
    s = b_pad // LANES
    if block_s is None:
        block_s = _default_block_s(s, num_experts)

    # Relayout to the lane+sublane dense [2, S, 128] view.
    # TODO(synk): these x.T / out.T relayouts are the only remaining extra HBM
    # round-trips; use gate_layers_shallow_forward_dense to avoid them.
    xt = x.T  # [2, B]
    if b_pad != batch:
        xt = jnp.pad(xt, ((0, 0), (0, b_pad - batch)))
    x3 = xt.reshape(IN_FEATURES, s, LANES)  # free view

    out3 = _gate_pallas(x3, w1, b1, w2, b2, block_s=block_s)  # [E, S, 128]

    return out3.reshape(num_experts, b_pad)[:, :batch].T  # [B, E]


def init_params(key, num_experts):
    """PyTorch nn.Linear default init U[-1/sqrt(fan_in), 1/sqrt(fan_in)]."""
    k1, k2, k3, k4 = jax.random.split(key, 4)
    bound1 = 1.0 / jnp.sqrt(jnp.float32(IN_FEATURES))
    bound2 = 1.0 / jnp.sqrt(jnp.float32(HIDDEN))
    # stored as [in, out] (transpose of torch's [out, in]); biases 1-D
    w1 = jax.random.uniform(k1, (IN_FEATURES, HIDDEN), jnp.float32, -bound1, bound1)
    b1 = jax.random.uniform(k2, (HIDDEN,), jnp.float32, -bound1, bound1)
    w2 = jax.random.uniform(k3, (HIDDEN, num_experts), jnp.float32, -bound2, bound2)
    b2 = jax.random.uniform(k4, (num_experts,), jnp.float32, -bound2, bound2)
    return w1, b1, w2, b2


def _reference(x, w1, b1, w2, b2):
    h = jnp.maximum(x @ w1 + b1[None, :], 0.0)
    logits = h @ w2 + b2[None, :]
    return jax.nn.softmax(logits, axis=1)


if __name__ == "__main__":
    key = jax.random.PRNGKey(0)

    # --- Test 1: main case, batch=256 (S=2, single full-extent tile) -------
    num_experts = 4
    batch = 256
    kx, kp = jax.random.split(key)
    x = jax.random.normal(kx, (batch, IN_FEATURES), dtype=jnp.float32)
    w1, b1, w2, b2 = init_params(kp, num_experts)
    ref = _reference(x, w1, b1, w2, b2)

    out = jax.block_until_ready(gate_layers_shallow_forward(x, w1, b1, w2, b2))
    assert out.shape == (batch, num_experts)
    assert jnp.allclose(out, ref, atol=2e-3, rtol=2e-3)
    assert jnp.allclose(jnp.sum(out, axis=1), 1.0, atol=2e-3)

    # Dense (transpose-free) entry point matches too.
    x3 = x.T.reshape(IN_FEATURES, batch // LANES, LANES)
    out_dense = jax.block_until_ready(
        gate_layers_shallow_forward_dense(x3, w1, b1, w2, b2))
    assert jnp.allclose(out_dense.reshape(num_experts, batch).T, ref,
                        atol=2e-3, rtol=2e-3)

    # --- Test 2: ragged batch (padding path) + different expert count ------
    num_experts2 = 8
    batch2 = 300  # pads to 384 -> S=3
    kx2, kp2 = jax.random.split(jax.random.PRNGKey(1))
    x2 = jax.random.normal(kx2, (batch2, IN_FEATURES), dtype=jnp.float32)
    p2 = init_params(kp2, num_experts2)
    out2 = jax.block_until_ready(gate_layers_shallow_forward(x2, *p2))
    ref2 = _reference(x2, *p2)
    assert out2.shape == (batch2, num_experts2)
    assert jnp.allclose(out2, ref2, atol=2e-3, rtol=2e-3)
    assert jnp.allclose(jnp.sum(out2, axis=1), 1.0, atol=2e-3)

    # --- Test 3: multi-tile pipeline (S=16, block_s=8 -> grid=(2,)) --------
    batch3 = 2048
    kx3 = jax.random.PRNGKey(2)
    x3b = jax.random.normal(kx3, (batch3, IN_FEATURES), dtype=jnp.float32)
    out3 = jax.block_until_ready(
        gate_layers_shallow_forward(x3b, w1, b1, w2, b2, block_s=8))
    ref3 = _reference(x3b, w1, b1, w2, b2)
    assert jnp.allclose(out3, ref3, atol=2e-3, rtol=2e-3)
    assert jnp.allclose(jnp.sum(out3, axis=1), 1.0, atol=2e-3)

    print("KERNEL_OK")
</pallas_src>

<mosaic_0001>
module attributes {stable_mosaic.version = 11 : i64} {
  func.func @_gate_kernel(%arg0: i32, %arg1: memref<2x2x128xf32, #tpu.memory_space<vmem>>, %arg2: memref<2x4xf32, #tpu.memory_space<smem>>, %arg3: memref<4xf32, #tpu.memory_space<smem>>, %arg4: memref<4x4xf32, #tpu.memory_space<smem>>, %arg5: memref<4xf32, #tpu.memory_space<smem>>, %arg6: memref<4x2x128xf32, #tpu.memory_space<vmem>>) attributes {dimension_semantics = [#tpu.dimension_semantics<parallel>], iteration_bounds = array<i64: 1>, scalar_prefetch = 0 : i64, scratch_operands = 0 : i64, tpu.core_type = #tpu.core_type<tc>, window_params = [{transform_indices = @transform_0, window_bounds = array<i64: 2, 2, 128>}, {transform_indices = @transform_1, window_bounds = array<i64: 2, 4>}, {transform_indices = @transform_2, window_bounds = array<i64: 4>}, {transform_indices = @transform_3, window_bounds = array<i64: 4, 4>}, {transform_indices = @transform_4, window_bounds = array<i64: 4>}, {transform_indices = @transform_5, window_bounds = array<i64: 4, 2, 128>}]} {
    %c0 = arith.constant 0 : index
    %c0_0 = arith.constant 0 : index
    %c0_1 = arith.constant 0 : index
    %0 = vector.load %arg1[%c0, %c0_0, %c0_1] : memref<2x2x128xf32, #tpu.memory_space<vmem>>, vector<1x2x128xf32>
    %1 = vector.shape_cast %0 : vector<1x2x128xf32> to vector<2x128xf32>
    %c1 = arith.constant 1 : index
    %c0_2 = arith.constant 0 : index
    %c0_3 = arith.constant 0 : index
    %2 = vector.load %arg1[%c1, %c0_2, %c0_3] : memref<2x2x128xf32, #tpu.memory_space<vmem>>, vector<1x2x128xf32>
    %3 = vector.shape_cast %2 : vector<1x2x128xf32> to vector<2x128xf32>
    %c0_4 = arith.constant 0 : index
    %c0_5 = arith.constant 0 : index
    %4 = memref.load %arg2[%c0_4, %c0_5] : memref<2x4xf32, #tpu.memory_space<smem>>
    %5 = vector.broadcast %4 : f32 to vector<2x128xf32>
    %6 = arith.mulf %1, %5 : vector<2x128xf32>
    %c1_6 = arith.constant 1 : index
    %c0_7 = arith.constant 0 : index
    %7 = memref.load %arg2[%c1_6, %c0_7] : memref<2x4xf32, #tpu.memory_space<smem>>
    %8 = vector.broadcast %7 : f32 to vector<2x128xf32>
    %9 = arith.mulf %3, %8 : vector<2x128xf32>
    %10 = arith.addf %6, %9 : vector<2x128xf32>
    %c0_8 = arith.constant 0 : index
    %11 = memref.load %arg3[%c0_8] : memref<4xf32, #tpu.memory_space<smem>>
    %12 = vector.broadcast %11 : f32 to vector<2x128xf32>
    %13 = arith.addf %10, %12 : vector<2x128xf32>
    %cst = arith.constant 0.000000e+00 : f32
    %14 = vector.broadcast %cst : f32 to vector<2x128xf32>
    %15 = arith.maximumf %13, %14 : vector<2x128xf32>
    %c0_9 = arith.constant 0 : index
    %c1_10 = arith.constant 1 : index
    %16 = memref.load %arg2[%c0_9, %c1_10] : memref<2x4xf32, #tpu.memory_space<smem>>
    %17 = vector.broadcast %16 : f32 to vector<2x128xf32>
    %18 = arith.mulf %1, %17 : vector<2x128xf32>
    %c1_11 = arith.constant 1 : index
    %c1_12 = arith.constant 1 : index
    %19 = memref.load %arg2[%c1_11, %c1_12] : memref<2x4xf32, #tpu.memory_space<smem>>
    %20 = vector.broadcast %19 : f32 to vector<2x128xf32>
    %21 = arith.mulf %3, %20 : vector<2x128xf32>
    %22 = arith.addf %18, %21 : vector<2x128xf32>
    %c1_13 = arith.constant 1 : index
    %23 = memref.load %arg3[%c1_13] : memref<4xf32, #tpu.memory_space<smem>>
    %24 = vector.broadcast %23 : f32 to vector<2x128xf32>
    %25 = arith.addf %22, %24 : vector<2x128xf32>
    %cst_14 = arith.constant 0.000000e+00 : f32
    %26 = vector.broadcast %cst_14 : f32 to vector<2x128xf32>
    %27 = arith.maximumf %25, %26 : vector<2x128xf32>
    %c0_15 = arith.constant 0 : index
    %c2 = arith.constant 2 : index
    %28 = memref.load %arg2[%c0_15, %c2] : memref<2x4xf32, #tpu.memory_space<smem>>
    %29 = vector.broadcast %28 : f32 to vector<2x128xf32>
    %30 = arith.mulf %1, %29 : vector<2x128xf32>
    %c1_16 = arith.constant 1 : index
    %c2_17 = arith.constant 2 : index
    %31 = memref.load %arg2[%c1_16, %c2_17] : memref<2x4xf32, #tpu.memory_space<smem>>
    %32 = vector.broadcast %31 : f32 to vector<2x128xf32>
    %33 = arith.mulf %3, %32 : vector<2x128xf32>
    %34 = arith.addf %30, %33 : vector<2x128xf32>
    %c2_18 = arith.constant 2 : index
    %35 = memref.load %arg3[%c2_18] : memref<4xf32, #tpu.memory_space<smem>>
    %36 = vector.broadcast %35 : f32 to vector<2x128xf32>
    %37 = arith.addf %34, %36 : vector<2x128xf32>
    %cst_19 = arith.constant 0.000000e+00 : f32
    %38 = vector.broadcast %cst_19 : f32 to vector<2x128xf32>
    %39 = arith.maximumf %37, %38 : vector<2x128xf32>
    %c0_20 = arith.constant 0 : index
    %c3 = arith.constant 3 : index
    %40 = memref.load %arg2[%c0_20, %c3] : memref<2x4xf32, #tpu.memory_space<smem>>
    %41 = vector.broadcast %40 : f32 to vector<2x128xf32>
    %42 = arith.mulf %1, %41 : vector<2x128xf32>
    %c1_21 = arith.constant 1 : index
    %c3_22 = arith.constant 3 : index
    %43 = memref.load %arg2[%c1_21, %c3_22] : memref<2x4xf32, #tpu.memory_space<smem>>
    %44 = vector.broadcast %43 : f32 to vector<2x128xf32>
    %45 = arith.mulf %3, %44 : vector<2x128xf32>
    %46 = arith.addf %42, %45 : vector<2x128xf32>
    %c3_23 = arith.constant 3 : index
    %47 = memref.load %arg3[%c3_23] : memref<4xf32, #tpu.memory_space<smem>>
    %48 = vector.broadcast %47 : f32 to vector<2x128xf32>
    %49 = arith.addf %46, %48 : vector<2x128xf32>
    %cst_24 = arith.constant 0.000000e+00 : f32
    %50 = vector.broadcast %cst_24 : f32 to vector<2x128xf32>
    %51 = arith.maximumf %49, %50 : vector<2x128xf32>
    %c0_25 = arith.constant 0 : index
    %c0_26 = arith.constant 0 : index
    %52 = memref.load %arg4[%c0_25, %c0_26] : memref<4x4xf32, #tpu.memory_space<smem>>
    %53 = vector.broadcast %52 : f32 to vector<2x128xf32>
    %54 = arith.mulf %15, %53 : vector<2x128xf32>
    %c1_27 = arith.constant 1 : index
    %c0_28 = arith.constant 0 : index
    %55 = memref.load %arg4[%c1_27, %c0_28] : memref<4x4xf32, #tpu.memory_space<smem>>
    %56 = vector.broadcast %55 : f32 to vector<2x128xf32>
    %57 = arith.mulf %27, %56 : vector<2x128xf32>
    %58 = arith.addf %54, %57 : vector<2x128xf32>
    %c2_29 = arith.constant 2 : index
    %c0_30 = arith.constant 0 : index
    %59 = memref.load %arg4[%c2_29, %c0_30] : memref<4x4xf32, #tpu.memory_space<smem>>
    %60 = vector.broadcast %59 : f32 to vector<2x128xf32>
    %61 = arith.mulf %39, %60 : vector<2x128xf32>
    %62 = arith.addf %58, %61 : vector<2x128xf32>
    %c3_31 = arith.constant 3 : index
    %c0_32 = arith.constant 0 : index
    %63 = memref.load %arg4[%c3_31, %c0_32] : memref<4x4xf32, #tpu.memory_space<smem>>
    %64 = vector.broadcast %63 : f32 to vector<2x128xf32>
    %65 = arith.mulf %51, %64 : vector<2x128xf32>
    %66 = arith.addf %62, %65 : vector<2x128xf32>
    %c0_33 = arith.constant 0 : index
    %67 = memref.load %arg5[%c0_33] : memref<4xf32, #tpu.memory_space<smem>>
    %68 = vector.broadcast %67 : f32 to vector<2x128xf32>
    %69 = arith.addf %66, %68 : vector<2x128xf32>
    %c0_34 = arith.constant 0 : index
    %c1_35 = arith.constant 1 : index
    %70 = memref.load %arg4[%c0_34, %c1_35] : memref<4x4xf32, #tpu.memory_space<smem>>
    %71 = vector.broadcast %70 : f32 to vector<2x128xf32>
    %72 = arith.mulf %15, %71 : vector<2x128xf32>
    %c1_36 = arith.constant 1 : index
    %c1_37 = arith.constant 1 : index
    %73 = memref.load %arg4[%c1_36, %c1_37] : memref<4x4xf32, #tpu.memory_space<smem>>
    %74 = vector.broadcast %73 : f32 to vector<2x128xf32>
    %75 = arith.mulf %27, %74 : vector<2x128xf32>
    %76 = arith.addf %72, %75 : vector<2x128xf32>
    %c2_38 = arith.constant 2 : index
    %c1_39 = arith.constant 1 : index
    %77 = memref.load %arg4[%c2_38, %c1_39] : memref<4x4xf32, #tpu.memory_space<smem>>
    %78 = vector.broadcast %77 : f32 to vector<2x128xf32>
    %79 = arith.mulf %39, %78 : vector<2x128xf32>
    %80 = arith.addf %76, %79 : vector<2x128xf32>
    %c3_40 = arith.constant 3 : index
    %c1_41 = arith.constant 1 : index
    %81 = memref.load %arg4[%c3_40, %c1_41] : memref<4x4xf32, #tpu.memory_space<smem>>
    %82 = vector.broadcast %81 : f32 to vector<2x128xf32>
    %83 = arith.mulf %51, %82 : vector<2x128xf32>
    %84 = arith.addf %80, %83 : vector<2x128xf32>
    %c1_42 = arith.constant 1 : index
    %85 = memref.load %arg5[%c1_42] : memref<4xf32, #tpu.memory_space<smem>>
    %86 = vector.broadcast %85 : f32 to vector<2x128xf32>
    %87 = arith.addf %84, %86 : vector<2x128xf32>
    %c0_43 = arith.constant 0 : index
    %c2_44 = arith.constant 2 : index
    %88 = memref.load %arg4[%c0_43, %c2_44] : memref<4x4xf32, #tpu.memory_space<smem>>
    %89 = vector.broadcast %88 : f32 to vector<2x128xf32>
    %90 = arith.mulf %15, %89 : vector<2x128xf32>
    %c1_45 = arith.constant 1 : index
    %c2_46 = arith.constant 2 : index
    %91 = memref.load %arg4[%c1_45, %c2_46] : memref<4x4xf32, #tpu.memory_space<smem>>
    %92 = vector.broadcast %91 : f32 to vector<2x128xf32>
    %93 = arith.mulf %27, %92 : vector<2x128xf32>
    %94 = arith.addf %90, %93 : vector<2x128xf32>
    %c2_47 = arith.constant 2 : index
    %c2_48 = arith.constant 2 : index
    %95 = memref.load %arg4[%c2_47, %c2_48] : memref<4x4xf32, #tpu.memory_space<smem>>
    %96 = vector.broadcast %95 : f32 to vector<2x128xf32>
    %97 = arith.mulf %39, %96 : vector<2x128xf32>
    %98 = arith.addf %94, %97 : vector<2x128xf32>
    %c3_49 = arith.constant 3 : index
    %c2_50 = arith.constant 2 : index
    %99 = memref.load %arg4[%c3_49, %c2_50] : memref<4x4xf32, #tpu.memory_space<smem>>
    %100 = vector.broadcast %99 : f32 to vector<2x128xf32>
    %101 = arith.mulf %51, %100 : vector<2x128xf32>
    %102 = arith.addf %98, %101 : vector<2x128xf32>
    %c2_51 = arith.constant 2 : index
    %103 = memref.load %arg5[%c2_51] : memref<4xf32, #tpu.memory_space<smem>>
    %104 = vector.broadcast %103 : f32 to vector<2x128xf32>
    %105 = arith.addf %102, %104 : vector<2x128xf32>
    %c0_52 = arith.constant 0 : index
    %c3_53 = arith.constant 3 : index
    %106 = memref.load %arg4[%c0_52, %c3_53] : memref<4x4xf32, #tpu.memory_space<smem>>
    %107 = vector.broadcast %106 : f32 to vector<2x128xf32>
    %108 = arith.mulf %15, %107 : vector<2x128xf32>
    %c1_54 = arith.constant 1 : index
    %c3_55 = arith.constant 3 : index
    %109 = memref.load %arg4[%c1_54, %c3_55] : memref<4x4xf32, #tpu.memory_space<smem>>
    %110 = vector.broadcast %109 : f32 to vector<2x128xf32>
    %111 = arith.mulf %27, %110 : vector<2x128xf32>
    %112 = arith.addf %108, %111 : vector<2x128xf32>
    %c2_56 = arith.constant 2 : index
    %c3_57 = arith.constant 3 : index
    %113 = memref.load %arg4[%c2_56, %c3_57] : memref<4x4xf32, #tpu.memory_space<smem>>
    %114 = vector.broadcast %113 : f32 to vector<2x128xf32>
    %115 = arith.mulf %39, %114 : vector<2x128xf32>
    %116 = arith.addf %112, %115 : vector<2x128xf32>
    %c3_58 = arith.constant 3 : index
    %c3_59 = arith.constant 3 : index
    %117 = memref.load %arg4[%c3_58, %c3_59] : memref<4x4xf32, #tpu.memory_space<smem>>
    %118 = vector.broadcast %117 : f32 to vector<2x128xf32>
    %119 = arith.mulf %51, %118 : vector<2x128xf32>
    %120 = arith.addf %116, %119 : vector<2x128xf32>
    %c3_60 = arith.constant 3 : index
    %121 = memref.load %arg5[%c3_60] : memref<4xf32, #tpu.memory_space<smem>>
    %122 = vector.broadcast %121 : f32 to vector<2x128xf32>
    %123 = arith.addf %120, %122 : vector<2x128xf32>
    %124 = arith.maximumf %69, %87 : vector<2x128xf32>
    %125 = arith.maximumf %124, %105 : vector<2x128xf32>
    %126 = arith.maximumf %125, %123 : vector<2x128xf32>
    %127 = arith.subf %69, %126 : vector<2x128xf32>
    %128 = math.exp %127 : vector<2x128xf32>
    %129 = arith.subf %87, %126 : vector<2x128xf32>
    %130 = math.exp %129 : vector<2x128xf32>
    %131 = arith.subf %105, %126 : vector<2x128xf32>
    %132 = math.exp %131 : vector<2x128xf32>
    %133 = arith.subf %123, %126 : vector<2x128xf32>
    %134 = math.exp %133 : vector<2x128xf32>
    %135 = arith.addf %128, %130 : vector<2x128xf32>
    %136 = arith.addf %135, %132 : vector<2x128xf32>
    %137 = arith.addf %136, %134 : vector<2x128xf32>
    %138 = tpu.reciprocal %137 : vector<2x128xf32> -> vector<2x128xf32>
    %139 = arith.mulf %128, %138 : vector<2x128xf32>
    %c0_61 = arith.constant 0 : index
    %c0_62 = arith.constant 0 : index
    %c0_63 = arith.constant 0 : index
    %140 = vector.load %arg6[%c0_61, %c0_62, %c0_63] : memref<4x2x128xf32, #tpu.memory_space<vmem>>, vector<1x2x128xf32>
    %141 = vector.shape_cast %140 : vector<1x2x128xf32> to vector<2x128xf32>
    %142 = vector.shape_cast %139 : vector<2x128xf32> to vector<1x2x128xf32>
    tpu.vector_store %arg6[%c0_61, %c0_62, %c0_63], %142 {strides = array<i32>} : memref<4x2x128xf32, #tpu.memory_space<vmem>>, vector<1x2x128xf32>,
    %143 = arith.mulf %130, %138 : vector<2x128xf32>
    %c1_64 = arith.constant 1 : index
    %c0_65 = arith.constant 0 : index
    %c0_66 = arith.constant 0 : index
    %144 = vector.load %arg6[%c1_64, %c0_65, %c0_66] : memref<4x2x128xf32, #tpu.memory_space<vmem>>, vector<1x2x128xf32>
    %145 = vector.shape_cast %144 : vector<1x2x128xf32> to vector<2x128xf32>
    %146 = vector.shape_cast %143 : vector<2x128xf32> to vector<1x2x128xf32>
    tpu.vector_store %arg6[%c1_64, %c0_65, %c0_66], %146 {strides = array<i32>} : memref<4x2x128xf32, #tpu.memory_space<vmem>>, vector<1x2x128xf32>,
    %147 = arith.mulf %132, %138 : vector<2x128xf32>
    %c2_67 = arith.constant 2 : index
    %c0_68 = arith.constant 0 : index
    %c0_69 = arith.constant 0 : index
    %148 = vector.load %arg6[%c2_67, %c0_68, %c0_69] : memref<4x2x128xf32, #tpu.memory_space<vmem>>, vector<1x2x128xf32>
    %149 = vector.shape_cast %148 : vector<1x2x128xf32> to vector<2x128xf32>
    %150 = vector.shape_cast %147 : vector<2x128xf32> to vector<1x2x128xf32>
    tpu.vector_store %arg6[%c2_67, %c0_68, %c0_69], %150 {strides = array<i32>} : memref<4x2x128xf32, #tpu.memory_space<vmem>>, vector<1x2x128xf32>,
    %151 = arith.mulf %134, %138 : vector<2x128xf32>
    %c3_70 = arith.constant 3 : index
    %c0_71 = arith.constant 0 : index
    %c0_72 = arith.constant 0 : index
    %152 = vector.load %arg6[%c3_70, %c0_71, %c0_72] : memref<4x2x128xf32, #tpu.memory_space<vmem>>, vector<1x2x128xf32>
    %153 = vector.shape_cast %152 : vector<1x2x128xf32> to vector<2x128xf32>
    %154 = vector.shape_cast %151 : vector<2x128xf32> to vector<1x2x128xf32>
    tpu.vector_store %arg6[%c3_70, %c0_71, %c0_72], %154 {strides = array<i32>} : memref<4x2x128xf32, #tpu.memory_space<vmem>>, vector<1x2x128xf32>,
    return
  }
  func.func @transform_0(%arg0: i32) -> (i32, i32, i32) {
    %c0_i32 = arith.constant 0 : i32
    %c0_i32_0 = arith.constant 0 : i32
    %c0_i32_1 = arith.constant 0 : i32
    return %c0_i32, %arg0, %c0_i32_0 : i32, i32, i32
  }
  func.func @transform_1(%arg0: i32) -> (i32, i32) {
    %c0_i32 = arith.constant 0 : i32
    %c0_i32_0 = arith.constant 0 : i32
    %c0_i32_1 = arith.constant 0 : i32
    return %c0_i32, %c0_i32_0 : i32, i32
  }
  func.func @transform_2(%arg0: i32) -> i32 {
    %c0_i32 = arith.constant 0 : i32
    %c0_i32_0 = arith.constant 0 : i32
    return %c0_i32 : i32
  }
  func.func @transform_3(%arg0: i32) -> (i32, i32) {
    %c0_i32 = arith.constant 0 : i32
    %c0_i32_0 = arith.constant 0 : i32
    %c0_i32_1 = arith.constant 0 : i32
    return %c0_i32, %c0_i32_0 : i32, i32
  }
  func.func @transform_4(%arg0: i32) -> i32 {
    %c0_i32 = arith.constant 0 : i32
    %c0_i32_0 = arith.constant 0 : i32
    return %c0_i32 : i32
  }
  func.func @transform_5(%arg0: i32) -> (i32, i32, i32) {
    %c0_i32 = arith.constant 0 : i32
    %c0_i32_0 = arith.constant 0 : i32
    %c0_i32_1 = arith.constant 0 : i32
    return %c0_i32, %arg0, %c0_i32_0 : i32, i32, i32
  }
}

</mosaic_0001>

<bundles_post_ra>
// kernel: gate_layers_shallow_forward.1
= control target key start
LH: loop header
LB: loop body
LE: loop exit
PB: predicated region body
PF: predicated region fallthrough
CT: control target
= control target key end

     0   :  { %10 = vsyncpa [#allocation3], 0  ;;  %s463_s0 = inlined_call_operand.vmem [shape: f32[2,2,128], index: 0, kind: input, shape index: {}]   ;;  %s464_s1 = inlined_call_operand.vmem [shape: f32[2,4], index: 1, kind: input, shape index: {}]   ;;  %s465_s2 = inlined_call_operand.vmem [shape: f32[4], index: 2, kind: input, shape index: {}]   ;;  %s466_s3 = inlined_call_operand.vmem [shape: f32[4,4], index: 3, kind: input, shape index: {}]   ;;  %s467_s4 = inlined_call_operand.vmem [shape: f32[4], index: 4, kind: input, shape index: {}]   ;;  %s468_s5 = inlined_call_operand.vmem [shape: f32[4,2,128], index: 5, kind: output, shape index: {}]  }
   0x1   :  { %11 = vsyncpa [#allocation5], 0  ;;  %s31_s20 = sshll.u32 %s465_s2, 4  ;;  %s32_s20 = int_to_ptr.vmem [resolvable:$true] %s31_s20 }
   0x2   :  { %12 = vsyncpa [#allocation8], 0  ;;  %s21_s23 = sshll.u32 %s464_s1, 4  ;;  %s270_s24 = scalar_lea.vmem %s32_s20, 16  ;;  %s22_s23 = int_to_ptr.vmem [resolvable:$true] %s21_s23 }
   0x3   :  { %p271_p0 = scmp.ne.s32.totalorder %s32_s20, %s270_s24  ;;  %p275_p1 = scmp.lt.s32.totalorder %s32_s20, %s32_s20 }
   0x4   :  { %p276_p2 = scmp.lt.s32.totalorder %s270_s24, %s270_s24 }
   0x6   :  { %p277_p3 = por %p276_p2, %p275_p1 }
   0x8   :  { %p278_p4 = pnand %p277_p3, %p271_p0 }
   0xa   :  { %281 = shalt.err (!%p278_p4)
}
   0xb   :  { %s324_s25 = smov [#allocation4]   ;;  %s282_s26 = scalar_lea.vmem %s22_s23, 32 }
   0xc   :  { %34 = dma.vmem_to_smem %s32_s20, 16, %s324_s25, [#allocation5]  }
   0xd   :  { %p283_p5 = scmp.ne.s32.totalorder %s22_s23, %s282_s26  ;;  %p287_p6 = scmp.lt.s32.totalorder %s22_s23, %s22_s23 }
   0xe   :  { %p288_p7 = scmp.lt.s32.totalorder %s282_s26, %s282_s26 }
  0x10   :  { %p289_p8 = por %p288_p7, %p287_p6 }
  0x12   :  { %p290_p9 = pnand %p289_p8, %p283_p5 }
  0x14   :  { %293 = shalt.err (!%p290_p9)
}
  0x15   :  { %s325_s2 = smov [#allocation2]   ;;  %s41_s28 = sshll.u32 %s466_s3, 4  ;;  %s42_s28 = int_to_ptr.vmem [resolvable:$true] %s41_s28 }
  0x16   :  { %24 = dma.vmem_to_smem %s22_s23, 32, %s325_s2, [#allocation3]  }
  0x17   :  { %s51_s6 = sshll.u32 %s467_s4, 4  ;;  %s294_s7 = scalar_lea.vmem %s42_s28, 64  ;;  %s52_s6 = int_to_ptr.vmem [resolvable:$true] %s51_s6 }
  0x18   :  { %p295_p10 = scmp.ne.s32.totalorder %s42_s28, %s294_s7  ;;  %p299_p11 = scmp.lt.s32.totalorder %s42_s28, %s42_s28 }
  0x19   :  { %p300_p12 = scmp.lt.s32.totalorder %s294_s7, %s294_s7 }
  0x1b   :  { %p301_p13 = por %p300_p12, %p299_p11 }
  0x1d   :  { %p302_p0 = pnand %p301_p13, %p295_p10 }
  0x1f   :  { %305 = shalt.err (!%p302_p0)
}
  0x20   :  { %s326_s8 = smov [#allocation6]   ;;  %s306_s9 = scalar_lea.vmem %s52_s6, 16 }
  0x21   :  { %44 = dma.vmem_to_smem %s42_s28, 64, %s326_s8, [#allocation5]  }
  0x22   :  { %p307_p1 = scmp.ne.s32.totalorder %s52_s6, %s306_s9  ;;  %p311_p2 = scmp.lt.s32.totalorder %s52_s6, %s52_s6 }
  0x23   :  { %p312_p3 = scmp.lt.s32.totalorder %s306_s9, %s306_s9 }
  0x25   :  { %p313_p4 = por %p312_p3, %p311_p2 }
  0x27   :  { %p314_p5 = pnand %p313_p4, %p307_p1 }
  0x29   :  { %317 = shalt.err (!%p314_p5)
}
  0x2a   :  { %s327_s3 = smov [#allocation7]  }
  0x2b   :  { %54 = dma.vmem_to_smem %s52_s6, 16, %s327_s3, [#allocation8]  }
  0x2c   :  { %318 = dma.done.wait [#allocation3], 32  }
  0x2d   :  { %319 = vsyncadd [#allocation3], 4294967264 }
  0x2e   :  { %320 = dma.done.wait [#allocation5], 80  }
  0x2f   :  { %321 = vsyncadd [#allocation5], 4294967216 }
  0x30   :  { %322 = dma.done.wait [#allocation8], 16  }
  0x31   :  { %323 = vsyncadd [#allocation8], 4294967280 }
  0x32   :  { %67 = sfence }
  0x33   :  { %s71_s4 = sld [smem:[#allocation2]]  ;;  %s226_s12 = sld [smem:[#allocation2 + $0x1]]  ;;  %v68_v0 = vld [vmem:[%s463_s0] sm:$0x3]  ;;  %v224_v1 = vld [vmem:[%s463_s0 + $0x2] sm:$0x3] }
  0x34   :  { %s225_s10 = sld [smem:[#allocation2 + $0x80]]  ;;  %s227_s13 = sld [smem:[#allocation2 + $0x81]] }
  0x35   :  { %s370_s11 = sld [smem:[#allocation4]]  ;;  %s372_s14 = sld [smem:[#allocation4 + $0x1]] }
  0x36   :  { %s229_s15 = sld [smem:[#allocation2 + $0x2]]  ;;  %s382_s22 = sld [smem:[#allocation2 + $0x3]] }
  0x37   :  { %s230_s18 = sld [smem:[#allocation2 + $0x82]]  ;;  %s384_s23 = sld [smem:[#allocation2 + $0x83]] }
  0x38   :  { %s377_s19 = sld [smem:[#allocation4 + $0x2]]  ;;  %s386_s24 = sld [smem:[#allocation4 + $0x3]] }
  0x39   :  { %v72_v2 = vstv %s71_s4  ;;  %s388_s25 = sld [smem:[#allocation6]]  ;;  %v83_v6 = vstv %s226_s12  ;;  %s399_s27 = sld [smem:[#allocation6 + $0x1]] }
  0x3a   :  { %v73_v3 = vmul.f32 %v72_v2, %v68_v0  ;;  %v75_v4 = vstv %s225_s10  ;;  %s390_s26 = sld [smem:[#allocation6 + $0x80]]  ;;  %v86_v7 = vstv %s227_s13  ;;  %v84_v9 = vmul.f32 %v83_v6, %v68_v0  ;;  %s401_s28 = sld [smem:[#allocation6 + $0x81]] }
  0x3b   :  { %s392_s2 = sld [smem:[#allocation6 + $0x100]]  ;;  %v76_v5 = vmul.f32 %v224_v1, %v75_v4  ;;  %v79_v8 = vstv %s370_s11  ;;  %v87_v10 = vmul.f32 %v224_v1, %v86_v7  ;;  %v90_v13 = vstv %s372_s14  ;;  %s404_s29 = sld [smem:[#allocation6 + $0x101]] }
  0x3c   :  { %s394_s0 = sld [smem:[#allocation6 + $0x180]]  ;;  %v94_v11 = vstv %s229_s15  ;;  %s406_s30 = sld [smem:[#allocation6 + $0x181]]  ;;  %v105_v18 = vstv %s382_s22 }
  0x3d   :  { %s396_s1 = sld [smem:[#allocation7]]  ;;  %v77_v12 = vadd.f32 %v76_v5, %v73_v3  ;;  %v95_v14 = vmul.f32 %v94_v11, %v68_v0  ;;  %v97_v15 = vstv %s230_s18  ;;  %v88_v16 = vadd.f32 %v87_v10, %v84_v9  ;;  %s410_s6 = sld [smem:[#allocation6 + $0x2]] }
  0x3e   :  { %v98_v17 = vmul.f32 %v224_v1, %v97_v15  ;;  %v108_v19 = vstv %s384_s23  ;;  %v101_v21 = vstv %s377_s19  ;;  %v106_v22 = vmul.f32 %v105_v18, %v68_v0  ;;  %s413_s7 = sld [smem:[#allocation6 + $0x82]]  ;;  %s417_s8 = sld [smem:[#allocation7 + $0x1]] }
  0x3f   :  { %v80_v20 = vadd.f32 %v79_v8, %v77_v12  ;;  %v109_v23 = vmul.f32 %v224_v1, %v108_v19  ;;  %v91_v24 = vadd.f32 %v90_v13, %v88_v16  ;;  %v112_v26 = vstv %s386_s24  ;;  %s419_s9 = sld [smem:[#allocation6 + $0x102]]  ;;  %s425_s4 = sld [smem:[#allocation6 + $0x3]] }
  0x40   :  { %v99_v25 = vadd.f32 %v98_v17, %v95_v14  ;;  %v116_v27 = vstv %s388_s25  ;;  %v119_v30 = vstv %s390_s26  ;;  %s423_s3 = sld [smem:[#allocation6 + $0x182]]  ;;  %v134_v35 = vstv %s399_s27  ;;  %s429_s10 = sld [smem:[#allocation6 + $0x83]] }
  0x41   :  { %v81_v28 = vmax.f32 %v80_v20, 0.0  ;;  %v110_v29 = vadd.f32 %v109_v23, %v106_v22  ;;  %v123_v31 = vstv %s392_s2  ;;  %v92_v32 = vmax.f32 %v91_v24, 0.0  ;;  %s432_s11 = sld [smem:[#allocation6 + $0x103]]  ;;  %s440_s13 = sld [smem:[#allocation7 + $0x2]] }
  0x42   :  { %v102_v33 = vadd.f32 %v101_v21, %v99_v25  ;;  %v127_v34 = vstv %s394_s0  ;;  %v137_v39 = vstv %s401_s28  ;;  %s434_s12 = sld [smem:[#allocation6 + $0x183]]  ;;  %v141_v43 = vstv %s404_s29 }
  0x43   :  { %v113_v36 = vadd.f32 %v112_v26, %v110_v29  ;;  %v117_v37 = vmul.f32 %v116_v27, %v81_v28  ;;  %v135_v38 = vmul.f32 %v134_v35, %v81_v28  ;;  %v120_v41 = vmul.f32 %v119_v30, %v92_v32  ;;  %s252_s14 = sld [smem:[#allocation7 + $0x3]] }
  0x44   :  { %v103_v40 = vmax.f32 %v102_v33, 0.0  ;;  %v138_v42 = vmul.f32 %v137_v39, %v92_v32  ;;  %v131_v45 = vstv %s396_s1  ;;  %v145_v46 = vstv %s406_s30 }
  0x45   :  { %v114_v44 = vmax.f32 %v113_v36, 0.0  ;;  %v152_v47 = vstv %s410_s6  ;;  %v121_v48 = vadd.f32 %v120_v41, %v117_v37  ;;  %v155_v55 = vstv %s413_s7 }
  0x46   :  { %v124_v49 = vmul.f32 %v123_v31, %v103_v40  ;;  %v139_v50 = vadd.f32 %v138_v42, %v135_v38  ;;  %v142_v51 = vmul.f32 %v141_v43, %v103_v40  ;;  %v153_v54 = vmul.f32 %v152_v47, %v81_v28 }
  0x47   :  { %v128_v52 = vmul.f32 %v127_v34, %v114_v44  ;;  %v146_v53 = vmul.f32 %v145_v46, %v114_v44  ;;  %v156_v58 = vmul.f32 %v155_v55, %v92_v32  ;;  %v159_v59 = vstv %s419_s9 }
  0x48   :  { %v125_v56 = vadd.f32 %v124_v49, %v121_v48  ;;  %v143_v57 = vadd.f32 %v142_v51, %v139_v50  ;;  %v149_v60 = vstv %s417_s8  ;;  %v160_v61 = vmul.f32 %v159_v59, %v103_v40 }
  0x49   :  { %v163_v62 = vstv %s423_s3  ;;  %v170_v63 = vstv %s425_s4  ;;  %v157_v2 = vadd.f32 %v156_v58, %v153_v54  ;;  %v173_v5 = vstv %s429_s10 }
  0x4a   :  { %v129_v0 = vadd.f32 %v128_v52, %v125_v56  ;;  %v147_v1 = vadd.f32 %v146_v53, %v143_v57  ;;  %v164_v3 = vmul.f32 %v163_v62, %v114_v44  ;;  %v171_v4 = vmul.f32 %v170_v63, %v81_v28 }
  0x4b   :  { %v177_v6 = vstv %s432_s11  ;;  %v181_v7 = vstv %s434_s12  ;;  %v161_v10 = vadd.f32 %v160_v61, %v157_v2  ;;  %v174_v11 = vmul.f32 %v173_v5, %v92_v32 }
  0x4c   :  { %v132_v8 = vadd.f32 %v131_v45, %v129_v0  ;;  %v150_v9 = vadd.f32 %v149_v60, %v147_v1  ;;  %v167_v12 = vstv %s440_s13  ;;  %v178_v13 = vmul.f32 %v177_v6, %v103_v40 }
  0x4d   :  { %v165_v14 = vadd.f32 %v164_v3, %v161_v10  ;;  %v175_v15 = vadd.f32 %v174_v11, %v171_v4  ;;  %v182_v16 = vmul.f32 %v181_v7, %v114_v44  ;;  %v185_v20 = vstv %s252_s14 }
  0x4e   :  { %v187_v17 = vmax.f32 %v132_v8, %v150_v9 }
  0x4f   :  { %v168_v18 = vadd.f32 %v167_v12, %v165_v14  ;;  %v179_v19 = vadd.f32 %v178_v13, %v175_v15 }
  0x51   :  { %v183_v21 = vadd.f32 %v182_v16, %v179_v19  ;;  %v188_v22 = vmax.f32 %v187_v17, %v168_v18 }
  0x53   :  { %v186_v23 = vadd.f32 %v185_v20, %v183_v21 }
  0x55   :  { %v189_v24 = vmax.f32 %v188_v22, %v186_v23 }
  0x57   :  { %v190_v25 = vsub.f32 %v132_v8, %v189_v24  ;;  %v193_v26 = vsub.f32 %v150_v9, %v189_v24  ;;  %v196_v27 = vsub.f32 %v168_v18, %v189_v24  ;;  %v199_v28 = vsub.f32 %v186_v23, %v189_v24 }
  0x59   :  { %v191_v29 = vmul.f32 1.442695, %v190_v25  ;;  %v194_v30 = vmul.f32 1.442695, %v193_v26  ;;  %v197_v31 = vmul.f32 1.442695, %v196_v27 }
  0x5a   :  { %v200_v32 = vmul.f32 1.442695, %v199_v28 }
  0x5b   :  { %260 = vpow2.f32 %v191_v29 }
  0x5c   :  { %262 = vpow2.f32 %v194_v30 }
  0x5d   :  { %264 = vpow2.f32 %v197_v31 }
  0x5e   :  { %266 = vpow2.f32 %v200_v32 }
  0x65   :  { %v261_v33 = vpop.eup %260 }
  0x66   :  { %v263_v34 = vpop.eup %262 }
  0x67   :  { %v265_v35 = vpop.eup %264  ;;  %v202_v36 = vadd.f32 %v263_v34, %v261_v33 }
  0x68   :  { %v267_v37 = vpop.eup %266 }
  0x69   :  { %v203_v38 = vadd.f32 %v265_v35, %v202_v36 }
  0x6b   :  { %v204_v39 = vadd.f32 %v267_v37, %v203_v38 }
  0x6d   :  { %268 = vrcp.f32 %v204_v39 }
  0x77   :  { %v269_v40 = vpop.eup %268 }
  0x78   :  { %v206_v41 = vmul.f32 %v269_v40, %v261_v33  ;;  %v208_v42 = vmul.f32 %v269_v40, %v263_v34  ;;  %v211_v43 = vmul.f32 %v269_v40, %v265_v35  ;;  %v214_v44 = vmul.f32 %v269_v40, %v267_v37 }
  0x7a   :  { %207 = vst [vmem:[%s468_s5] sm:$0x3] %v206_v41  ;;  %253 = vst [vmem:[%s468_s5 + $0x2] sm:$0x3] %v208_v42 }
  0x7b   :  { %254 = vst [vmem:[%s468_s5 + $0x4] sm:$0x3] %v211_v43  ;;  %255 = vst [vmem:[%s468_s5 + $0x6] sm:$0x3] %v214_v44 }
  0x7c   :  { %221 = vsyncpa [#allocation3], 1 }
  0x7d   :  { %222 = vsyncpa [#allocation5], 1 }
  0x7e   :  { %223 = vsyncpa [#allocation8], 1 }

</bundles_post_ra>
